<compile_context>
chip_gen: v7x
topology: tpu7x:2x2x1
jax: 0.10.0
libtpu: 0.0.40
codegen_flags: <defaults>
</compile_context>

<pallas_src>
import functools

import jax
import jax.numpy as jnp
from jax import lax
from jax.experimental import pallas as pl
from jax.experimental.pallas import tpu as pltpu

# ---- "cfg" (synthetic, deterministic) --------------------------------------
N_FEATURES = 16    # len(cfg.features)
N_HIDDEN   = 32    # cfg.n_hidden
N_LAYERS   = 2     # cfg.n_layers
N_CLASSES  = 1     # cfg.n_classes
NEG_SLOPE  = 0.01  # nn.LeakyReLU default negative_slope

# Rows per grid step.  Capped at 8192 because the batch-major (tile_n, F=16) x block
# lane-pads 16->128 in VMEM (8x buffer): ~4 MiB per buffer, ~14 MiB total double-buffered
# incl. activations — comfortably inside v7x's 64 MiB VMEM and the 32 MiB scoped budget.
TILE_N_MAX = 8192


def _leaky(x):
    return jnp.where(x >= 0, x, NEG_SLOPE * x)


def _round_up(x, m):
    return ((x + m - 1) // m) * m


def _net_kernel(x_ref, y_ref, w1_ref, b1_ref, w2_ref, b2_ref, wh_ref, bh_ref,
                preds_ref, psum_ref, *, n_rows, tile_n):
    # x_ref: (tile_n, F) batch-major block, streamed straight from the caller's layout.
    # Weights are native PyTorch (out, in); biases are (out, 1) columns, so activations
    # stay feature-major (out_features, tile_n): batch on the lane axis, lane-dense.
    x = x_ref[...]

    # cnn[0]: Linear(F, H) + LeakyReLU.  h^T = W1 @ x^T, written by contracting the feature
    # axes of both operands -> no host-side transposed copy; Mosaic handles orientation.
    h = lax.dot_general(w1_ref[...], x, (((1,), (1,)), ((), ())),
                        preferred_element_type=jnp.float32)
    h = _leaky(h + b1_ref[...])

    # cnn[1..]: the SAME Linear(H, H) + LeakyReLU applied n_layers times (shared weights).
    # Ref loads hoisted out of the unrolled loop.
    w2 = w2_ref[...]
    b2 = b2_ref[...]
    for _ in range(N_LAYERS):
        h = jnp.dot(w2, h.astype(w2.dtype), preferred_element_type=jnp.float32)
        h = _leaky(h + b2)

    # head: Linear(H, n_classes) + LeakyReLU.  (C, tile_n) -> lane-dense writeback.
    wh = wh_ref[...]
    p = jnp.dot(wh, h.astype(wh.dtype), preferred_element_type=jnp.float32)
    p = _leaky(p + bh_ref[...])
    preds_ref[...] = p.astype(preds_ref.dtype)

    # loss terms: |y - p| / (|0.01 + y| + |0.01 + p|), masked to valid (non-padded) batch
    # columns; emit a per-block partial sum (global mean done in the wrapper) so the row
    # axis stays "parallel" for 2-TC sharding on v7x.
    y = y_ref[...]                                   # (1, tile_n)
    col = pl.program_id(0) * tile_n + lax.broadcasted_iota(jnp.int32, (1, tile_n), 1)
    valid = col < n_rows
    num = jnp.abs(y - p)
    den = jnp.abs(0.01 + y) + jnp.abs(0.01 + p)
    terms = jnp.where(valid, num, 0.0) / jnp.where(valid, den, 1.0)
    s = jnp.sum(terms)
    # Aligned (8,128) splat of the scalar (<1% of traffic at large tiles); wrapper reads [0,0].
    psum_ref[...] = jnp.broadcast_to(s, (8, 128))


def net_forward(x, y, params):
    """x: (N, F); y: (N,). Returns {'loss','preds','target_norm'} like the PyTorch module."""
    w1, b1, w2, b2, wh, bh = params
    n, f = x.shape
    h = w1.shape[0]
    c = wh.shape[0]
    assert c == 1, "wrapper assumes n_classes == 1 (matches the reference .squeeze(-1))"

    # bf16-on-the-wire only if the producer already emits bf16 (halves the dominant HBM
    # stream); f32 stays f32 — a wrapper-side cast would ADD an HBM pass on that stream.
    in_dtype = jnp.bfloat16 if x.dtype == jnp.bfloat16 else jnp.float32

    # Tile selection: as large as the VMEM budget allows (per-step overhead ~0.35 us), but
    # >= 2 grid steps whenever possible so both v7x TensorCores get work.
    n128 = _round_up(n, 128)
    if n128 > 128:
        tile_n = min(TILE_N_MAX, _round_up(pl.cdiv(n128, 2), 128))
    else:
        tile_n = 128
    n_pad = _round_up(n, tile_n)
    grid_n = n_pad // tile_n

    x_in = x.astype(in_dtype)          # no-op for f32 / bf16 inputs (matches .float())
    y_in = y.astype(jnp.float32)
    if n_pad != n:
        # Only pay the pad copy when the batch is ragged w.r.t. the tile.
        x_in = jnp.pad(x_in, ((0, n_pad - n), (0, 0)))
        y_in = jnp.pad(y_in, (0, n_pad - n))
    y_in = y_in.reshape(1, n_pad)      # contiguous reshape: free

    w1c, w2c, whc = (t.astype(in_dtype) for t in (w1, w2, wh))
    b1c, b2c, bhc = (t.astype(jnp.float32) for t in (b1, b2, bh))

    kernel = functools.partial(_net_kernel, n_rows=n, tile_n=tile_n)

    def pinned(shape):
        nd = len(shape)
        # Full-array block + constant index map -> resident in VMEM across the grid.
        return pl.BlockSpec(shape, lambda i, _nd=nd: (0,) * _nd)

    itemsize = jnp.dtype(in_dtype).itemsize
    flops = 2 * n * (f * h + N_LAYERS * h * h + h * c) + 10 * n * (h + c)
    bytes_accessed = (n_pad * f * itemsize + n_pad * 4 * (1 + c)
                      + grid_n * 8 * 128 * 4
                      + itemsize * (w1.size + w2.size + wh.size)
                      + 4 * (b1.size + b2.size + bh.size))

    preds_t, psums = pl.pallas_call(
        kernel,
        grid=(grid_n,),
        in_specs=[
            pl.BlockSpec((tile_n, f), lambda i: (i, 0)),   # x   (streamed, batch-major)
            pl.BlockSpec((1, tile_n), lambda i: (0, i)),   # y   (streamed)
            pinned(w1c.shape), pinned(b1c.shape),          # weights: pinned resident
            pinned(w2c.shape), pinned(b2c.shape),
            pinned(whc.shape), pinned(bhc.shape),
        ],
        out_specs=(
            pl.BlockSpec((c, tile_n), lambda i: (0, i)),   # preds (lane-dense)
            pl.BlockSpec((8, 128), lambda i: (i, 0)),      # per-block loss partial sums
        ),
        out_shape=(
            jax.ShapeDtypeStruct((c, n_pad), jnp.float32),
            jax.ShapeDtypeStruct((grid_n * 8, 128), jnp.float32),
        ),
        compiler_params=pltpu.CompilerParams(
            dimension_semantics=("parallel",),             # 2-TC sharding on v7x
            vmem_limit_bytes=32 * 1024 * 1024),            # raise v5e's 16 MiB scoped default
        cost_estimate=pl.CostEstimate(flops=flops, transcendentals=0,
                                      bytes_accessed=bytes_accessed),
    )(x_in, y_in, w1c, b1c, w2c, b2c, whc, bhc)

    preds = preds_t[0, :n]                                 # == .squeeze(-1) -> (N,)
    loss = psums.reshape(grid_n, 8, 128)[:, 0, 0].sum() / jnp.float32(n)
    return {'loss': loss, 'preds': preds, 'target_norm': y}


def init_params(key):
    """Deterministic PyTorch-style (uniform +/- 1/sqrt(fan_in)) init.

    Weights in the native PyTorch (out_features, in_features) layout; biases as
    (out_features, 1) columns so they broadcast across the lane (batch) axis.
    """
    ks = jax.random.split(key, 6)

    def lin(kw, kb, fan_in, fan_out):
        bound = 1.0 / jnp.sqrt(jnp.float32(fan_in))
        w = jax.random.uniform(kw, (fan_out, fan_in), jnp.float32, -bound, bound)
        b = jax.random.uniform(kb, (fan_out, 1), jnp.float32, -bound, bound)
        return w, b

    w1, b1 = lin(ks[0], ks[1], N_FEATURES, N_HIDDEN)
    w2, b2 = lin(ks[2], ks[3], N_HIDDEN, N_HIDDEN)    # shared hidden layer
    wh, bh = lin(ks[4], ks[5], N_HIDDEN, N_CLASSES)
    return (w1, b1, w2, b2, wh, bh)


if __name__ == "__main__":
    key = jax.random.PRNGKey(0)
    k_x, k_y, k_p = jax.random.split(key, 3)

    N = 8  # batch size
    x = jax.random.normal(k_x, (N, N_FEATURES), dtype=jnp.float32)  # batch['input']
    y = jax.random.normal(k_y, (N,), dtype=jnp.float32)             # batch['target_norm']

    params = init_params(k_p)

    out = net_forward(x, y, params)
    jax.block_until_ready(out['loss'])
    jax.block_until_ready(out['preds'])

    assert out['preds'].shape == (N,)
    assert out['loss'].shape == ()
    assert bool(jnp.isfinite(out['loss']))
    print("KERNEL_OK")
</pallas_src>

<mosaic_0001>
module attributes {stable_mosaic.version = 11 : i64} {
  func.func @_net_kernel(%arg0: i32, %arg1: memref<128x16xf32, #tpu.memory_space<vmem>>, %arg2: memref<1x128xf32, #tpu.memory_space<vmem>>, %arg3: memref<32x16xf32, #tpu.memory_space<vmem>>, %arg4: memref<32x1xf32, #tpu.memory_space<vmem>>, %arg5: memref<32x32xf32, #tpu.memory_space<vmem>>, %arg6: memref<32x1xf32, #tpu.memory_space<vmem>>, %arg7: memref<1x32xf32, #tpu.memory_space<vmem>>, %arg8: memref<1x1xf32, #tpu.memory_space<vmem>>, %arg9: memref<1x128xf32, #tpu.memory_space<vmem>>, %arg10: memref<8x128xf32, #tpu.memory_space<vmem>>) attributes {dimension_semantics = [#tpu.dimension_semantics<parallel>], iteration_bounds = array<i64: 1>, scalar_prefetch = 0 : i64, scratch_operands = 0 : i64, tpu.core_type = #tpu.core_type<tc>, window_params = [{transform_indices = @transform_0, window_bounds = array<i64: 128, 16>}, {transform_indices = @transform_1, window_bounds = array<i64: 1, 128>}, {pipeline_mode = #tpu.pipeline_mode<synchronous>, transform_indices = @transform_2, window_bounds = array<i64: 32, 16>}, {pipeline_mode = #tpu.pipeline_mode<synchronous>, transform_indices = @transform_3, window_bounds = array<i64: 32, 1>}, {pipeline_mode = #tpu.pipeline_mode<synchronous>, transform_indices = @transform_4, window_bounds = array<i64: 32, 32>}, {pipeline_mode = #tpu.pipeline_mode<synchronous>, transform_indices = @transform_5, window_bounds = array<i64: 32, 1>}, {pipeline_mode = #tpu.pipeline_mode<synchronous>, transform_indices = @transform_6, window_bounds = array<i64: 1, 32>}, {pipeline_mode = #tpu.pipeline_mode<synchronous>, transform_indices = @transform_7, window_bounds = array<i64: 1, 1>}, {transform_indices = @transform_8, window_bounds = array<i64: 1, 128>}, {transform_indices = @transform_9, window_bounds = array<i64: 8, 128>}]} {
    %c0 = arith.constant 0 : index
    %c0_0 = arith.constant 0 : index
    %0 = vector.load %arg1[%c0, %c0_0] : memref<128x16xf32, #tpu.memory_space<vmem>>, vector<128x16xf32>
    %c0_1 = arith.constant 0 : index
    %c0_2 = arith.constant 0 : index
    %1 = vector.load %arg3[%c0_1, %c0_2] : memref<32x16xf32, #tpu.memory_space<vmem>>, vector<32x16xf32>
    %cst = arith.constant dense<0.000000e+00> : vector<32x128xf32>
    %2 = tpu.matmul %1, %0, %cst {dimension_numbers = #tpu.dot_dimension_numbers<[1], [1], [0], [0], [0, 0, 1, 0], [], []>} : vector<32x16xf32>, vector<128x16xf32>, vector<32x128xf32> -> vector<32x128xf32>
    %c0_3 = arith.constant 0 : index
    %c0_4 = arith.constant 0 : index
    %3 = vector.load %arg4[%c0_3, %c0_4] : memref<32x1xf32, #tpu.memory_space<vmem>>, vector<32x1xf32>
    %4 = vector.broadcast %3 : vector<32x1xf32> to vector<32x128xf32>
    %5 = arith.addf %2, %4 : vector<32x128xf32>
    %cst_5 = arith.constant 0.000000e+00 : f32
    %6 = vector.broadcast %cst_5 : f32 to vector<32x128xf32>
    %7 = arith.cmpf oge, %5, %6 : vector<32x128xf32>
    %cst_6 = arith.constant 0.00999999977 : f32
    %8 = vector.broadcast %cst_6 : f32 to vector<32x128xf32>
    %9 = arith.mulf %8, %5 : vector<32x128xf32>
    %10 = arith.select %7, %5, %9 : vector<32x128xi1>, vector<32x128xf32>
    %c0_7 = arith.constant 0 : index
    %c0_8 = arith.constant 0 : index
    %11 = vector.load %arg5[%c0_7, %c0_8] : memref<32x32xf32, #tpu.memory_space<vmem>>, vector<32x32xf32>
    %c0_9 = arith.constant 0 : index
    %c0_10 = arith.constant 0 : index
    %12 = vector.load %arg6[%c0_9, %c0_10] : memref<32x1xf32, #tpu.memory_space<vmem>>, vector<32x1xf32>
    %cst_11 = arith.constant dense<0.000000e+00> : vector<32x128xf32>
    %13 = tpu.matmul %11, %10, %cst_11 {dimension_numbers = #tpu.dot_dimension_numbers<[1], [0], [0], [1], [0, 0, 1, 1], [], []>} : vector<32x32xf32>, vector<32x128xf32>, vector<32x128xf32> -> vector<32x128xf32>
    %14 = vector.broadcast %12 : vector<32x1xf32> to vector<32x128xf32>
    %15 = arith.addf %13, %14 : vector<32x128xf32>
    %cst_12 = arith.constant 0.000000e+00 : f32
    %16 = vector.broadcast %cst_12 : f32 to vector<32x128xf32>
    %17 = arith.cmpf oge, %15, %16 : vector<32x128xf32>
    %cst_13 = arith.constant 0.00999999977 : f32
    %18 = vector.broadcast %cst_13 : f32 to vector<32x128xf32>
    %19 = arith.mulf %18, %15 : vector<32x128xf32>
    %20 = arith.select %17, %15, %19 : vector<32x128xi1>, vector<32x128xf32>
    %cst_14 = arith.constant dense<0.000000e+00> : vector<32x128xf32>
    %21 = tpu.matmul %11, %20, %cst_14 {dimension_numbers = #tpu.dot_dimension_numbers<[1], [0], [0], [1], [0, 0, 1, 1], [], []>} : vector<32x32xf32>, vector<32x128xf32>, vector<32x128xf32> -> vector<32x128xf32>
    %22 = vector.broadcast %12 : vector<32x1xf32> to vector<32x128xf32>
    %23 = arith.addf %21, %22 : vector<32x128xf32>
    %cst_15 = arith.constant 0.000000e+00 : f32
    %24 = vector.broadcast %cst_15 : f32 to vector<32x128xf32>
    %25 = arith.cmpf oge, %23, %24 : vector<32x128xf32>
    %cst_16 = arith.constant 0.00999999977 : f32
    %26 = vector.broadcast %cst_16 : f32 to vector<32x128xf32>
    %27 = arith.mulf %26, %23 : vector<32x128xf32>
    %28 = arith.select %25, %23, %27 : vector<32x128xi1>, vector<32x128xf32>
    %c0_17 = arith.constant 0 : index
    %c0_18 = arith.constant 0 : index
    %29 = vector.load %arg7[%c0_17, %c0_18] : memref<1x32xf32, #tpu.memory_space<vmem>>, vector<1x32xf32>
    %cst_19 = arith.constant dense<0.000000e+00> : vector<1x128xf32>
    %30 = tpu.matmul %29, %28, %cst_19 {dimension_numbers = #tpu.dot_dimension_numbers<[1], [0], [0], [1], [0, 0, 1, 1], [], []>} : vector<1x32xf32>, vector<32x128xf32>, vector<1x128xf32> -> vector<1x128xf32>
    %c0_20 = arith.constant 0 : index
    %c0_21 = arith.constant 0 : index
    %31 = vector.load %arg8[%c0_20, %c0_21] : memref<1x1xf32, #tpu.memory_space<vmem>>, vector<1x1xf32>
    %32 = vector.broadcast %31 : vector<1x1xf32> to vector<1x128xf32>
    %33 = arith.addf %30, %32 : vector<1x128xf32>
    %cst_22 = arith.constant 0.000000e+00 : f32
    %34 = vector.broadcast %cst_22 : f32 to vector<1x128xf32>
    %35 = arith.cmpf oge, %33, %34 : vector<1x128xf32>
    %cst_23 = arith.constant 0.00999999977 : f32
    %36 = vector.broadcast %cst_23 : f32 to vector<1x128xf32>
    %37 = arith.mulf %36, %33 : vector<1x128xf32>
    %38 = arith.select %35, %33, %37 : vector<1x128xi1>, vector<1x128xf32>
    %c0_24 = arith.constant 0 : index
    %c0_25 = arith.constant 0 : index
    %39 = vector.load %arg9[%c0_24, %c0_25] : memref<1x128xf32, #tpu.memory_space<vmem>>, vector<1x128xf32>
    tpu.vector_store %arg9[%c0_24, %c0_25], %38 {strides = array<i32>} : memref<1x128xf32, #tpu.memory_space<vmem>>, vector<1x128xf32>,
    %c0_26 = arith.constant 0 : index
    %c0_27 = arith.constant 0 : index
    %40 = vector.load %arg2[%c0_26, %c0_27] : memref<1x128xf32, #tpu.memory_space<vmem>>, vector<1x128xf32>
    %c128_i32 = arith.constant 128 : i32
    %41 = arith.muli %arg0, %c128_i32 : i32
    %42 = tpu.iota {dimensions = array<i32: 1>} : vector<1x128xi32>
    %43 = vector.broadcast %41 : i32 to vector<1x128xi32>
    %44 = arith.addi %43, %42 : vector<1x128xi32>
    %c8_i32 = arith.constant 8 : i32
    %45 = vector.broadcast %c8_i32 : i32 to vector<1x128xi32>
    %46 = arith.cmpi slt, %44, %45 : vector<1x128xi32>
    %47 = arith.subf %40, %38 : vector<1x128xf32>
    %48 = math.absf %47 : vector<1x128xf32>
    %cst_28 = arith.constant 0.00999999977 : f32
    %49 = vector.broadcast %cst_28 : f32 to vector<1x128xf32>
    %50 = arith.addf %49, %40 : vector<1x128xf32>
    %51 = math.absf %50 : vector<1x128xf32>
    %cst_29 = arith.constant 0.00999999977 : f32
    %52 = vector.broadcast %cst_29 : f32 to vector<1x128xf32>
    %53 = arith.addf %52, %38 : vector<1x128xf32>
    %54 = math.absf %53 : vector<1x128xf32>
    %55 = arith.addf %51, %54 : vector<1x128xf32>
    %cst_30 = arith.constant 0.000000e+00 : f32
    %56 = vector.broadcast %cst_30 : f32 to vector<1x128xf32>
    %57 = arith.select %46, %48, %56 : vector<1x128xi1>, vector<1x128xf32>
    %cst_31 = arith.constant 1.000000e+00 : f32
    %58 = vector.broadcast %cst_31 : f32 to vector<1x128xf32>
    %59 = arith.select %46, %55, %58 : vector<1x128xi1>, vector<1x128xf32>
    %60 = arith.divf %57, %59 : vector<1x128xf32>
    %61 = vector.shape_cast %60 : vector<1x128xf32> to vector<1x1x128xf32>
    %cst_32 = arith.constant dense<0.000000e+00> : vector<1xf32>
    %62 = vector.multi_reduction <add>, %61, %cst_32 [1, 2] : vector<1x1x128xf32> to vector<1xf32>
    %63 = vector.shape_cast %62 : vector<1xf32> to vector<1x1x1xf32>
    %64 = vector.extract %63[0, 0, 0] : f32 from vector<1x1x1xf32>
    %65 = vector.broadcast %64 : f32 to vector<8x128xf32>
    %c0_33 = arith.constant 0 : index
    %c0_34 = arith.constant 0 : index
    %66 = vector.load %arg10[%c0_33, %c0_34] : memref<8x128xf32, #tpu.memory_space<vmem>>, vector<8x128xf32>
    tpu.vector_store %arg10[%c0_33, %c0_34], %65 {strides = array<i32>} : memref<8x128xf32, #tpu.memory_space<vmem>>, vector<8x128xf32>,
    return
  }
  func.func @transform_0(%arg0: i32) -> (i32, i32) {
    %c0_i32 = arith.constant 0 : i32
    %c0_i32_0 = arith.constant 0 : i32
    return %arg0, %c0_i32 : i32, i32
  }
  func.func @transform_1(%arg0: i32) -> (i32, i32) {
    %c0_i32 = arith.constant 0 : i32
    %c0_i32_0 = arith.constant 0 : i32
    return %c0_i32, %arg0 : i32, i32
  }
  func.func @transform_2(%arg0: i32) -> (i32, i32) {
    %c0_i32 = arith.constant 0 : i32
    %c0_i32_0 = arith.constant 0 : i32
    %c0_i32_1 = arith.constant 0 : i32
    return %c0_i32, %c0_i32_0 : i32, i32
  }
  func.func @transform_3(%arg0: i32) -> (i32, i32) {
    %c0_i32 = arith.constant 0 : i32
    %c0_i32_0 = arith.constant 0 : i32
    %c0_i32_1 = arith.constant 0 : i32
    return %c0_i32, %c0_i32_0 : i32, i32
  }
  func.func @transform_4(%arg0: i32) -> (i32, i32) {
    %c0_i32 = arith.constant 0 : i32
    %c0_i32_0 = arith.constant 0 : i32
    %c0_i32_1 = arith.constant 0 : i32
    return %c0_i32, %c0_i32_0 : i32, i32
  }
  func.func @transform_5(%arg0: i32) -> (i32, i32) {
    %c0_i32 = arith.constant 0 : i32
    %c0_i32_0 = arith.constant 0 : i32
    %c0_i32_1 = arith.constant 0 : i32
    return %c0_i32, %c0_i32_0 : i32, i32
  }
  func.func @transform_6(%arg0: i32) -> (i32, i32) {
    %c0_i32 = arith.constant 0 : i32
    %c0_i32_0 = arith.constant 0 : i32
    %c0_i32_1 = arith.constant 0 : i32
    return %c0_i32, %c0_i32_0 : i32, i32
  }
  func.func @transform_7(%arg0: i32) -> (i32, i32) {
    %c0_i32 = arith.constant 0 : i32
    %c0_i32_0 = arith.constant 0 : i32
    %c0_i32_1 = arith.constant 0 : i32
    return %c0_i32, %c0_i32_0 : i32, i32
  }
  func.func @transform_8(%arg0: i32) -> (i32, i32) {
    %c0_i32 = arith.constant 0 : i32
    %c0_i32_0 = arith.constant 0 : i32
    return %c0_i32, %arg0 : i32, i32
  }
  func.func @transform_9(%arg0: i32) -> (i32, i32) {
    %c0_i32 = arith.constant 0 : i32
    %c0_i32_0 = arith.constant 0 : i32
    return %arg0, %c0_i32 : i32, i32
  }
}

</mosaic_0001>

<bundles_post_ra>
// kernel: tpu_custom_call.1
= control target key start
LH: loop header
LB: loop body
LE: loop exit
PB: predicated region body
PF: predicated region fallthrough
CT: control target
= control target key end

     0   :  { %s1132_s0 = inlined_call_operand.vmem [shape: f32[128,16], index: 0, kind: input, shape index: {}]   ;;  %s1133_s1 = inlined_call_operand.vmem [shape: f32[1,128], index: 1, kind: input, shape index: {}]   ;;  %s1134_s2 = inlined_call_operand.vmem [shape: f32[32,16], index: 2, kind: input, shape index: {}]   ;;  %s1135_s3 = inlined_call_operand.vmem [shape: f32[32,1], index: 3, kind: input, shape index: {}]   ;;  %s1136_s4 = inlined_call_operand.vmem [shape: f32[32,32], index: 4, kind: input, shape index: {}]   ;;  %s1137_s5 = inlined_call_operand.vmem [shape: f32[32,1], index: 5, kind: input, shape index: {}]   ;;  %s1138_s6 = inlined_call_operand.vmem [shape: f32[1,32], index: 6, kind: input, shape index: {}]   ;;  %s1139_s7 = inlined_call_operand.<no memory space> [shape: f32[1,1], index: 7, kind: input, shape index: {}]   ;;  %s1140_s8 = inlined_call_operand.hbm [shape: f32[1,128], index: 8, kind: output, shape index: {0}]   ;;  %s1141_s9 = inlined_call_operand.hbm [shape: f32[8,128], index: 9, kind: output, shape index: {1}]  }
   0x1   :  { %v15_v0 = vstv %s1139_s7 }
   0x2   :  { %16 = vst [vmem:[#allocation2] sm:$0x1] %v15_v0 }
   0x3   :  { %17 = vsyncpa [#allocation4], 0  ;;  %v35_v1 = vld [vmem:[%s1132_s0] sm:$0xff]  ;;  %v36_v2 = vld [vmem:[%s1132_s0 + $0x8] sm:$0xff]  ;;  %vm79_vm0 = vcmask 130048   ;;  %v896_v7 = vmov 0  }
   0x4   :  { %v37_v3 = vld [vmem:[%s1132_s0 + $0x10] sm:$0xff]  ;;  %v766_v4 = vpack.c.bf16 %v36_v2, %v35_v1  ;;  %vm966_vm1 = vmpackc.low %vm79_vm0, %vm79_vm0  ;;  %v38_v6 = vld [vmem:[%s1132_s0 + $0x18] sm:$0xff]  ;;  %844 = vset.pattern.permute.xlu0 %v896_v7  ;;  %845 = vset.pattern.permute.xlu1 %v896_v7 }
   0x5   :  { %v772_v8 = vpack.c.bf16 %v38_v6, %v37_v3  ;;  %v51_v9 = vld [vmem:[%s1134_s2] sm:$0xff]  ;;  %v40_v11 = vld [vmem:[%s1132_s0 + $0x28] sm:$0xff]  ;;  %v57_v13 = vld [vmem:[%s1135_s3 + $0x10] sm:$0xff] }
   0x6   :  { %768 = vmatprep.subr.msk.bf16.mxu0 %vm966_vm1, %v766_v4  ;;  %v39_v10 = vld [vmem:[%s1132_s0 + $0x20] sm:$0xff]  ;;  %721 = vmatprep.mubr.msk.f32.mxu0 %vm79_vm0, %v51_v9  ;;  %v56_v15 = vld [vmem:[%s1135_s3 + $0x8] sm:$0xff]  ;;  %v58_v16 = vld [vmem:[%s1135_s3 + $0x18] sm:$0xff] }
   0x7   :  { %771 = vmatpush3.bf16.xpose.msk.msra.mxu0 %vm966_vm1, %v766_v4  ;;  %v55_v12 = vld [vmem:[%s1135_s3] sm:$0xff]  ;;  %71 = vperm.xlu1 %845, %v57_v13   ;;  %v778_v14 = vpack.c.bf16 %v40_v11, %v39_v10 }
   0x8   :  { %774 = vmatprep.subr.msk.bf16.mxu0 %vm966_vm1, %v772_v8  ;;  %61 = vperm.xlu0 %844, %v55_v12  }
   0x9   :  { %18 = vsyncpa [#allocation6], 0  ;;  %v241_v17 = vld [vmem:[%s1137_s5] sm:$0xff]  ;;  %v41_v18 = vld [vmem:[%s1132_s0 + $0x30] sm:$0xff]  ;;  %vm265_vm2 = vcmask 261120   ;;  %vm898_vm11 = vmmov 0  }
   0xa   :  { %v42_v19 = vld [vmem:[%s1132_s0 + $0x38] sm:$0xff]  ;;  %v242_v20 = vld [vmem:[%s1137_s5 + $0x8] sm:$0xff]  ;;  %v243_v22 = vld [vmem:[%s1137_s5 + $0x10] sm:$0xff] }
   0xb   :  { %76 = vperm.xlu1 %845, %v58_v16   ;;  %v784_v21 = vpack.c.bf16 %v42_v19, %v41_v18  ;;  %v244_v23 = vld [vmem:[%s1137_s5 + $0x18] sm:$0xff]  ;;  %v473_v24 = vld [vmem:[#allocation2] sm:$0x1]  ;;  %v44_v26 = vld [vmem:[%s1132_s0 + $0x48] sm:$0xff] }
   0xc   :  { %66 = vperm.xlu0 %844, %v56_v15   ;;  %v43_v25 = vld [vmem:[%s1132_s0 + $0x40] sm:$0xff]  ;;  %v45_v28 = vld [vmem:[%s1132_s0 + $0x50] sm:$0xff]  ;;  %v46_v29 = vld [vmem:[%s1132_s0 + $0x58] sm:$0xff] }
   0xd   :  { %v790_v27 = vpack.c.bf16 %v44_v26, %v43_v25  ;;  %v796_v30 = vpack.c.bf16 %v46_v29, %v45_v28  ;;  %v47_v31 = vld [vmem:[%s1132_s0 + $0x60] sm:$0xff]  ;;  %v48_v32 = vld [vmem:[%s1132_s0 + $0x68] sm:$0xff]  ;;  %v49_v34 = vld [vmem:[%s1132_s0 + $0x70] sm:$0xff]  ;;  %v899_v25 = vmov 0.0  }
   0xe   :  { %v802_v33 = vpack.c.bf16 %v48_v32, %v47_v31  ;;  %v50_v35 = vld [vmem:[%s1132_s0 + $0x78] sm:$0xff]  ;;  %v52_v37 = vld [vmem:[%s1134_s2 + $0x8] sm:$0xff]  ;;  %v53_v38 = vld [vmem:[%s1134_s2 + $0x10] sm:$0xff] }
   0xf   :  { %777 = vmatpush3.bf16.xpose.msk.msra.mxu0 %vm966_vm1, %v772_v8  ;;  %252 = vperm.xlu1 %845, %v242_v20   ;;  %v808_v36 = vpack.c.bf16 %v50_v35, %v49_v34  ;;  %v54_v39 = vld [vmem:[%s1134_s2 + $0x18] sm:$0xff]  ;;  %v237_v40 = vld [vmem:[%s1136_s4] sm:$0xff]  ;;  %v238_v63 = vld [vmem:[%s1136_s4 + $0x8] sm:$0xff] }
  0x10   :  { %780 = vmatprep.subr.msk.bf16.mxu0 %vm966_vm1, %v778_v14  ;;  %247 = vperm.xlu0 %844, %v241_v17   ;;  %v239_v0 = vld [vmem:[%s1136_s4 + $0x10] sm:$0xff]  ;;  %v240_v1 = vld [vmem:[%s1136_s4 + $0x18] sm:$0xff] }
  0x11   :  { %735 = vmatprep.mubr.msk.f32.mxu1 %vm265_vm2, %v237_v40 }
  0x13   :  { %262 = vperm.xlu1 %845, %v244_v23  }
  0x14   :  { %257 = vperm.xlu0 %844, %v243_v22  }
  0x17   :  { %783 = vmatpush3.bf16.xpose.msk.msra.mxu0 %vm966_vm1, %v778_v14 }
  0x18   :  { %786 = vmatprep.subr.msk.bf16.mxu0 %vm966_vm1, %v784_v21  ;;  %476 = vperm.xlu0 %844, %v473_v24   ;;  %v897_v24 = vmov 0.0|0.0  }
  0x1f   :  { %789 = vmatpush3.bf16.xpose.msk.msra.mxu0 %vm966_vm1, %v784_v21 }
  0x20   :  { %792 = vmatprep.subr.msk.bf16.mxu0 %vm966_vm1, %v790_v27 }
  0x27   :  { %795 = vmatpush3.bf16.xpose.msk.msra.mxu0 %vm966_vm1, %v790_v27 }
  0x28   :  { %798 = vmatprep.subr.msk.bf16.mxu0 %vm966_vm1, %v796_v30 }
  0x2f   :  { %801 = vmatpush3.bf16.xpose.msk.msra.mxu0 %vm966_vm1, %v796_v30 }
  0x30   :  { %804 = vmatprep.subr.msk.bf16.mxu0 %vm966_vm1, %v802_v33 }
  0x37   :  { %807 = vmatpush3.bf16.xpose.msk.msra.mxu0 %vm966_vm1, %v802_v33 }
  0x38   :  { %810 = vmatprep.subr.msk.bf16.mxu0 %vm966_vm1, %v808_v36 }
  0x3f   :  { %813 = vmatpush3.bf16.xpose.msk.msra.mxu0 %vm966_vm1, %v808_v36 }
  0x46   :  { %722 = vmatmul.mubr.msk.f32.vlgmr.msra.gmra.mrb[0].mxu0 %vm79_vm0, %v52_v37 }
  0x47   :  { %724 = vmatprep.mubr.msk.f32.mxu0 %vm79_vm0, %v53_v38 }
  0x4a   :  { %725 = vmatmul.mubr.msk.f32.gmra.mrb[2].mxu0 %vm79_vm0, %v54_v39 }
  0x86   :  { %v72_v42 = vpop.permute.xlu1 %71 }
  0x87   :  { %v62_v41 = vpop.permute.xlu0 %61 }
  0x8a   :  { %v77_v49 = vpop.permute.xlu1 %76 }
  0x8b   :  { %v67_v43 = vpop.permute.xlu0 %66 }
  0x8e   :  { %v253_v2 = vpop.permute.xlu1 %252 }
  0x8f   :  { %v248_v3 = vpop.permute.xlu0 %247 }
  0x92   :  { %v263_v9 = vpop.permute.xlu1 %262 }
  0x93   :  { %v258_v12 = vpop.permute.xlu0 %257 }
 0x119   :  { %v723_v44 = vpop.f32.mrb[0].mxu0 }
 0x11a   :  { %v212_v45 = vadd.f32 %v723_v44, %v67_v43  ;;  %v206_v46 = vpop.f32.mrb[1].mxu0  ;;  %v472_v44 = vld [vmem:[%s1138_s6] sm:$0x1] }
 0x11b   :  { %v207_v47 = vadd.f32 %v206_v46, %v62_v41 }
 0x11c   :  { %v230_v48 = vmul.f32 0.01, %v212_v45  ;;  %vm226_vm3 = vcmp.ge.f32.partialorder %v212_v45, 0.0 }
 0x11d   :  { %v229_v50 = vmul.f32 0.01, %v207_v47  ;;  %v726_v51 = vpop.f32.mrb[2].mxu0  ;;  %vm225_vm4 = vcmp.ge.f32.partialorder %v207_v47, 0.0 }
 0x11e   :  { %v222_v52 = vadd.f32 %v726_v51, %v77_v49  ;;  %v216_v53 = vpop.f32.mrb[3].mxu0  ;;  %v234_v54 = vsel %vm226_vm3, %v212_v45, %v230_v48  ;;  %v479_v45 = vlaneseq  ;;  %v477_v48 = vpop.permute.xlu0 %476 }
 0x11f   :  { %v217_v55 = vadd.f32 %v216_v53, %v72_v42  ;;  %v233_v56 = vsel %vm225_vm4, %v207_v47, %v229_v50  ;;  %v560_v50 = vld [vmem:[%s1133_s1] sm:$0x1]  ;;  %s900_s1 = smov [#allocation3]  }
 0x120   :  { %vm228_vm5 = vcmp.ge.f32.partialorder %v222_v52, 0.0  ;;  %v232_v57 = vmul.f32 0.01, %v222_v52  ;;  %v814_v58 = vpack.c.bf16 %v234_v54, %v233_v56  ;;  %v480_v46 = vshrl.u32 %v479_v45, 7  ;;  %s597_s6 = sshll.u32 %s900_s1, 4  ;;  %s598_s6 = int_to_ptr.vmem [resolvable:$true] %s597_s6 }
 0x121   :  { %vm227_vm6 = vcmp.ge.f32.partialorder %v217_v55, 0.0  ;;  %v231_v59 = vmul.f32 0.01, %v217_v55  ;;  %v569_v54 = vadd.f32 0.01, %v560_v50  ;;  %s848_s27 = scalar_lea.vmem %s598_s6, 16  ;;  %p853_p1 = scmp.lt.s32.totalorder %s598_s6, %s598_s6 }
 0x122   :  { %815 = vmatprep.subr.bf16.mxu1 %v814_v58  ;;  %v236_v60 = vsel %vm228_vm5, %v222_v52, %v232_v57  ;;  %v481_v47 = vsub.s32 0, %v480_v46  ;;  %p849_p0 = scmp.ne.s32.totalorder %s598_s6, %s848_s27  ;;  %s852_s28 = scalar_lea.vmem %s598_s6, 32 }
 0x123   :  { %817 = vmatpush3.bf16.msra.mxu1 %v814_v58  ;;  %v235_v61 = vsel %vm227_vm6, %v217_v55, %v231_v59  ;;  %v570_v58 = vand.u32 2147483647, %v569_v54  ;;  %v563_v59 = vand.u32 127, %v479_v45  ;;  %p854_p2 = scmp.lt.s32.totalorder %s852_s28, %s848_s27 }
 0x124   :  { %v818_v62 = vpack.c.bf16 %v236_v60, %v235_v61  ;;  %v482_v49 = vrot.slane %v477_v48, %v481_v47 }
 0x125   :  { %vm566_vm1 = vcmp.lt.s32.totalorder %v563_v59, 8  ;;  %p855_p3 = por %p854_p2, %p853_p1 }
 0x126   :  { %819 = vmatprep.subr.bf16.mxu1 %v818_v62 }
 0x127   :  { %821 = vmatpush3.bf16.msra.mxu1 %v818_v62  ;;  %p856_p4 = pnand %p855_p3, %p849_p0 }
 0x12a   :  { %736 = vmatmul.mubr.msk.f32.vlgmr.msra.gmra.mrb[0].mxu1 %vm265_vm2, %v238_v63 }
 0x12b   :  { %738 = vmatprep.mubr.msk.f32.mxu1 %vm265_vm2, %v239_v0 }
 0x12e   :  { %739 = vmatmul.mubr.msk.f32.gmra.mrb[2].mxu1 %vm265_vm2, %v240_v1 }
 0x12f   :  { %749 = vmatprep.mubr.msk.f32.mxu1 %vm265_vm2, %v237_v40 }
 0x1fd   :  { %v737_v4 = vpop.f32.mrb[0].mxu1 }
 0x1fe   :  { %v350_v5 = vadd.f32 %v737_v4, %v253_v2  ;;  %v344_v6 = vpop.f32.mrb[1].mxu1 }
 0x1ff   :  { %v345_v7 = vadd.f32 %v344_v6, %v248_v3 }
 0x200   :  { %vm364_vm7 = vcmp.ge.f32.partialorder %v350_v5, 0.0  ;;  %v368_v8 = vmul.f32 0.01, %v350_v5 }
 0x201   :  { %vm363_vm8 = vcmp.ge.f32.partialorder %v345_v7, 0.0  ;;  %v367_v10 = vmul.f32 0.01, %v345_v7  ;;  %v740_v11 = vpop.f32.mrb[2].mxu1 }
 0x202   :  { %v360_v13 = vadd.f32 %v740_v11, %v263_v9  ;;  %v354_v14 = vpop.f32.mrb[3].mxu1  ;;  %v372_v15 = vsel %vm364_vm7, %v350_v5, %v368_v8 }
 0x203   :  { %v355_v16 = vadd.f32 %v354_v14, %v258_v12  ;;  %v371_v17 = vsel %vm363_vm8, %v345_v7, %v367_v10 }
 0x204   :  { %vm366_vm9 = vcmp.ge.f32.partialorder %v360_v13, 0.0  ;;  %v370_v18 = vmul.f32 0.01, %v360_v13  ;;  %v822_v19 = vpack.c.bf16 %v372_v15, %v371_v17 }
 0x205   :  { %vm365_vm10 = vcmp.ge.f32.partialorder %v355_v16, 0.0  ;;  %v369_v20 = vmul.f32 0.01, %v355_v16 }
 0x206   :  { %823 = vmatprep.subr.bf16.mxu1 %v822_v19  ;;  %v374_v21 = vsel %vm366_vm9, %v360_v13, %v370_v18 }
 0x207   :  { %825 = vmatpush3.bf16.msra.mxu1 %v822_v19  ;;  %v373_v22 = vsel %vm365_vm10, %v355_v16, %v369_v20 }
 0x208   :  { %v826_v23 = vpack.c.bf16 %v374_v21, %v373_v22 }
 0x20a   :  { %827 = vmatprep.subr.bf16.mxu1 %v826_v23 }
 0x20b   :  { %829 = vmatpush3.bf16.msra.mxu1 %v826_v23 }
 0x20c   :  { %830 = vmatprep.subr.bf16.mxu1 %v897_v24 }
 0x20e   :  { %750 = vmatmul.mubr.msk.f32.vlgmr.msra.gmra.mrb[4].mxu1 %vm265_vm2, %v238_v63 }
 0x20f   :  { %752 = vmatprep.mubr.msk.f32.mxu1 %vm265_vm2, %v239_v0 }
 0x212   :  { %753 = vmatmul.mubr.msk.f32.gmra.mrb[6].mxu1 %vm265_vm2, %v240_v1 }
 0x213   :  { %763 = vmatprep.mubr.msk.f32.mxu1 %vm898_vm11, %v899_v25 }
 0x2e1   :  { %v751_v26 = vpop.f32.mrb[4].mxu1 }
 0x2e2   :  { %v447_v27 = vadd.f32 %v751_v26, %v253_v2  ;;  %v441_v28 = vpop.f32.mrb[5].mxu1 }
 0x2e3   :  { %v442_v29 = vadd.f32 %v441_v28, %v248_v3 }
 0x2e4   :  { %vm461_vm12 = vcmp.ge.f32.partialorder %v447_v27, 0.0  ;;  %v465_v30 = vmul.f32 0.01, %v447_v27 }
 0x2e5   :  { %vm460_vm13 = vcmp.ge.f32.partialorder %v442_v29, 0.0  ;;  %v464_v31 = vmul.f32 0.01, %v442_v29  ;;  %v754_v32 = vpop.f32.mrb[6].mxu1 }
 0x2e6   :  { %v469_v33 = vsel %vm461_vm12, %v447_v27, %v465_v30  ;;  %v457_v34 = vadd.f32 %v754_v32, %v263_v9  ;;  %v451_v35 = vpop.f32.mrb[7].mxu1 }
 0x2e7   :  { %v468_v36 = vsel %vm460_vm13, %v442_v29, %v464_v31  ;;  %v452_v37 = vadd.f32 %v451_v35, %v258_v12 }
 0x2e8   :  { %v831_v38 = vpack.c.bf16 %v469_v33, %v468_v36  ;;  %vm463_vm14 = vcmp.ge.f32.partialorder %v457_v34, 0.0  ;;  %v467_v39 = vmul.f32 0.01, %v457_v34 }
 0x2e9   :  { %vm462_vm15 = vcmp.ge.f32.partialorder %v452_v37, 0.0  ;;  %v466_v40 = vmul.f32 0.01, %v452_v37 }
 0x2ea   :  { %v471_v41 = vsel %vm463_vm14, %v457_v34, %v467_v39  ;;  %832 = vmatpush3.bf16.msra.mxu1 %v831_v38 }
 0x2eb   :  { %v470_v42 = vsel %vm462_vm15, %v452_v37, %v466_v40  ;;  %833 = vmatprep.subr.bf16.mxu1 %v897_v24 }
 0x2ec   :  { %v834_v43 = vpack.c.bf16 %v471_v41, %v470_v42 }
 0x2ee   :  { %835 = vmatpush3.bf16.msra.mxu1 %v834_v43 }
 0x2f1   :  { %764 = vmatmul.mubr.msk.f32.vlgmr.msra.gmra.mrb[8].mxu1 %vm265_vm2, %v472_v44  ;;  %vm578_vm2 = vcmask 1040384  }
 0x3c4   :  { %v552_v51 = vpop.f32.mrb[8].mxu1 }
 0x3c5   :  { %v553_v52 = vadd.f32 %v552_v51, %v482_v49  ;;  %v765_v53 = vpop.f32.mrb[9].mxu1 }
 0x3c7   :  { %vm556_vm0 = vcmp.ge.f32.partialorder %v553_v52, 0.0  ;;  %v557_v55 = vmul.f32 0.01, %v553_v52 }
 0x3c9   :  { %v558_v56 = vsel %vm556_vm0, %v553_v52, %v557_v55 }
 0x3ca   :  { %v571_v57 = vadd.f32 0.01, %v558_v56  ;;  %559 = vst [vmem:[#allocation3] sm:$0x1] %v558_v56  ;;  %v567_v63 = vsub.f32 %v560_v50, %v558_v56 }
 0x3cc   :  { %v572_v60 = vand.u32 2147483647, %v571_v57  ;;  %v568_v0 = vand.u32 2147483647, %v567_v63 }
 0x3ce   :  { %v573_v61 = vadd.f32 %v572_v60, %v570_v58  ;;  %v574_v2 = vsel %vm566_vm1, %v568_v0, 0.0 }
 0x3d0   :  { %v575_v62 = vsel %vm566_vm1, %v573_v61, 1.0 }
 0x3d1   :  { %846 = vrcp.f32 %v575_v62 }
 0x3db   :  { %v847_v1 = vpop.eup %846 }
 0x3dc   :  { %v577_v3 = vmul.f32 %v847_v1, %v574_v2 }
 0x3de   :  { %v579_v4 = vsel %vm578_vm2, %v577_v3, 0.0 }
 0x3df   :  { %580 = vadd.xlane.f32.xlu1 %v579_v4 }
 0x3e0   :  { %859 = shalt.err (!%p856_p4)
}
 0x3e1   :  { %s860_s10 = scalar_lea.hbm %s1140_s8, 16 }
 0x3e2   :  { %p861_p5 = scmp.ne.s32.totalorder %s1140_s8, %s860_s10  ;;  %p864_p6 = scmp.lt.u32.totalorder %s860_s10, %s1140_s8 }
 0x3e4   :  { %p866_p7 = pnand %p864_p6, %p861_p5 }
 0x3e6   :  { %869 = shalt.err (!%p866_p7)
}
 0x3e7   :  { %600 = dma.vmem_to_hbm [thread:$0]  %s598_s6, 16, %s1140_s8, [#allocation4]  }
 0x3e8   :  { %s901_s3 = smov [#allocation5]  }
 0x3e9   :  { %s607_s7 = sshll.u32 %s901_s3, 4  ;;  %s608_s7 = int_to_ptr.vmem [resolvable:$true] %s607_s7 }
 0x3ea   :  { %s870_s17 = scalar_lea.vmem %s608_s7, 128  ;;  %p875_p9 = scmp.lt.s32.totalorder %s608_s7, %s608_s7 }
 0x3eb   :  { %p871_p8 = scmp.ne.s32.totalorder %s608_s7, %s870_s17  ;;  %p876_p10 = scmp.lt.s32.totalorder %s870_s17, %s870_s17 }
 0x3ed   :  { %p877_p11 = por %p876_p10, %p875_p9 }
 0x3ef   :  { %p878_p12 = pnand %p877_p11, %p871_p8 }
 0x46c   :  { %v581_v5 = vpop.xlane.xlu1 %580 }
 0x46d   :  { %v582_v6 = vrot.slane %v581_v5, 4 }
 0x46f   :  { %v583_v7 = vadd.f32 %v582_v6, %v581_v5 }
 0x471   :  { %v584_v8 = vrot.slane %v583_v7, 2 }
 0x473   :  { %v585_v9 = vadd.f32 %v584_v8, %v583_v7 }
 0x475   :  { %v586_v10 = vrot.slane %v585_v9, 1 }
 0x477   :  { %v587_v11 = vadd.f32 %v586_v10, %v585_v9 }
 0x479   :  { %836 = vpush %v587_v11 }
 0x4aa   :  { %s837_s0 = spop %836 }
 0x4ab   :  { %v589_v12 = vstv %s837_s0 }
 0x4ac   :  { %590 = vst [vmem:[#allocation5] sm:$0xff] %v589_v12 }
 0x4ad   :  { %881 = shalt.err (!%p878_p12)
}
 0x4ae   :  { %s882_s19 = scalar_lea.hbm %s1141_s9, 128 }
 0x4af   :  { %p883_p13 = scmp.ne.s32.totalorder %s1141_s9, %s882_s19  ;;  %p886_p0 = scmp.lt.u32.totalorder %s882_s19, %s1141_s9 }
 0x4b1   :  { %p888_p1 = pnand %p886_p0, %p883_p13 }
 0x4b3   :  { %891 = shalt.err (!%p888_p1)
}
 0x4b4   :  { %610 = dma.vmem_to_hbm [thread:$0]  %s608_s7, 128, %s1141_s9, [#allocation6]  }
 0x4b5   :  { %892 = dma.done.wait [#allocation4], 16  }
 0x4b6   :  { %893 = vsyncadd [#allocation4], 4294967280 }
 0x4b7   :  { %894 = dma.done.wait [#allocation6], 128  }
 0x4b8   :  { %895 = vsyncadd [#allocation6], 4294967168 }
 0x4b9   :  { %617 = vsyncpa [#allocation4], 1 }
 0x4ba   :  { %618 = vsyncpa [#allocation6], 1 }

</bundles_post_ra>
